<compile_context>
chip_gen: v5e
topology: v5e:2x2
jax: 0.10.0
libtpu: 0.0.40
codegen_flags: <defaults>
</compile_context>

<pallas_src>
import functools

import jax
import jax.numpy as jnp
from jax.experimental import pallas as pl
from jax.experimental.pallas import tpu as pltpu


def cbow_kernel(xc_ref, wct_ref, bc_ref, wot_ref, bo_ref, out_ref):
    # Fused context projection: one K=2V matmul (0.5 already folded into Wct),
    # f32 accumulation on the MXU, single hidden-bias add.
    h = jnp.dot(xc_ref[...], wct_ref[...],
                preferred_element_type=jnp.float32) + bc_ref[...]
    # Output projection for this vocab tile (bf16 operands, f32 accumulate).
    out = jnp.dot(h.astype(wot_ref.dtype), wot_ref[...],
                  preferred_element_type=jnp.float32) + bo_ref[...]
    out_ref[...] = out.astype(out_ref.dtype)


def prepare_cbow_params(w1, b1, w2, b2, wo, bo, compute_dtype=jnp.bfloat16):
    """One-time parameter preparation (run at init, NOT per forward call).

    w1, w2: (E, V)   b1, b2: (E,)   wo: (V, E)   bo: (V,)
    Returns (wct, bc, wot, bor):
      wct: (2V, E) = [0.5*w1.T ; 0.5*w2.T]   (compute_dtype)
      bc : (1, E)  = 0.5*(b1+b2)             (f32)
      wot: (E, V)  = wo.T                    (compute_dtype)
      bor: (1, V)  = bo                      (f32)
    """
    wct = (jnp.concatenate([w1.T, w2.T], axis=0) * 0.5).astype(compute_dtype)
    bc = (0.5 * (b1 + b2)).reshape(1, -1).astype(jnp.float32)
    wot = wo.T.astype(compute_dtype)
    bor = bo.reshape(1, -1).astype(jnp.float32)
    return wct, bc, wot, bor


@functools.partial(jax.jit, static_argnames=("tn",))
def simple_cbow_forward(x1, x2, wct, bc, wot, bor, tn=128):
    """x1, x2: (B, V) f32.  Prepared params from prepare_cbow_params().

    Returns (B, V) f32 logits.
    """
    B, V = x1.shape
    twoV, E = wct.shape
    assert twoV == 2 * V
    assert V % tn == 0, "output tile tn must divide vocab_size"
    n_tiles = V // tn
    cdt = wct.dtype

    # Fused context input: [x1 | x2], cast once to the MXU compute dtype.
    xc = jnp.concatenate([x1, x2], axis=1).astype(cdt)          # (B, 2V)

    return pl.pallas_call(
        cbow_kernel,
        out_shape=jax.ShapeDtypeStruct((B, V), jnp.float32),
        grid=(n_tiles,),
        in_specs=[
            pl.BlockSpec((B, twoV), lambda j: (0, 0)),   # xc  (resident)
            pl.BlockSpec((twoV, E), lambda j: (0, 0)),   # Wct (resident)
            pl.BlockSpec((1, E),    lambda j: (0, 0)),   # bc  (resident)
            pl.BlockSpec((E, tn),   lambda j: (0, j)),   # Wo.T (tiled along V)
            pl.BlockSpec((1, tn),   lambda j: (0, j)),   # bo   (tiled along V)
        ],
        out_specs=pl.BlockSpec((B, tn), lambda j: (0, j)),
        compiler_params=pltpu.CompilerParams(
            # Independent output-vocab tiles -> shard across TCs on v7x.
            dimension_semantics=("parallel",)),
    )(xc, wct, bc, wot, bor)


def simple_cbow_reference(x1, x2, w1, b1, w2, b2, wo, bo):
    h0 = x1 @ w1.T + b1
    h1 = x2 @ w2.T + b2
    h = (h0 + h1) * 0.5
    return h @ wo.T + bo


if __name__ == "__main__":
    vocab_size = 256
    embedding_dim = 128
    # Note: B=8 fills only a few MXU rows; real workloads should batch >=128
    # examples per call for full MXU utilization (kernel is batch-agnostic).
    batch = 8

    key = jax.random.PRNGKey(0)
    kx1, kx2, kw1, kb1, kw2, kb2, kwo, kbo = jax.random.split(key, 8)

    # Inputs: CBOW context vectors (e.g. one-hot-ish); random floats here.
    x1 = jax.random.normal(kx1, (batch, vocab_size), dtype=jnp.float32)
    x2 = jax.random.normal(kx2, (batch, vocab_size), dtype=jnp.float32)

    # Deterministic parameter init (PyTorch Linear-style uniform bounds).
    bound_in = 1.0 / (vocab_size ** 0.5)
    bound_out = 1.0 / (embedding_dim ** 0.5)
    w1 = jax.random.uniform(kw1, (embedding_dim, vocab_size),
                            minval=-bound_in, maxval=bound_in, dtype=jnp.float32)
    b1 = jax.random.uniform(kb1, (embedding_dim,),
                            minval=-bound_in, maxval=bound_in, dtype=jnp.float32)
    w2 = jax.random.uniform(kw2, (embedding_dim, vocab_size),
                            minval=-bound_in, maxval=bound_in, dtype=jnp.float32)
    b2 = jax.random.uniform(kb2, (embedding_dim,),
                            minval=-bound_in, maxval=bound_in, dtype=jnp.float32)
    wo = jax.random.uniform(kwo, (vocab_size, embedding_dim),
                            minval=-bound_out, maxval=bound_out, dtype=jnp.float32)
    bo = jax.random.uniform(kbo, (vocab_size,),
                            minval=-bound_out, maxval=bound_out, dtype=jnp.float32)

    # One-time parameter prep (fuse / fold / transpose / cast).
    wct, bc, wot, bor = prepare_cbow_params(w1, b1, w2, b2, wo, bo)

    out = simple_cbow_forward(x1, x2, wct, bc, wot, bor)
    out = jax.block_until_ready(out)

    ref = simple_cbow_reference(x1, x2, w1, b1, w2, b2, wo, bo)
    assert out.shape == (batch, vocab_size)
    # bf16 matmul operands with f32 accumulation -> ~1e-3 abs error at these
    # shapes; tolerance loosened accordingly (was 1e-4 in the pure-f32 version).
    assert jnp.allclose(out, ref, atol=2e-2, rtol=2e-2), "mismatch vs reference"

    print("KERNEL_OK")
</pallas_src>

<mosaic_0001>
module attributes {stable_mosaic.version = 11 : i64} {
  func.func @cbow_kernel(%arg0: i32, %arg1: memref<8x512xbf16, #tpu.memory_space<vmem>>, %arg2: memref<512x128xbf16, #tpu.memory_space<vmem>>, %arg3: memref<1x128xf32, #tpu.memory_space<vmem>>, %arg4: memref<128x128xbf16, #tpu.memory_space<vmem>>, %arg5: memref<1x128xf32, #tpu.memory_space<vmem>>, %arg6: memref<8x128xf32, #tpu.memory_space<vmem>>) attributes {dimension_semantics = [#tpu.dimension_semantics<parallel>], iteration_bounds = array<i64: 2>, scalar_prefetch = 0 : i64, scratch_operands = 0 : i64, tpu.core_type = #tpu.core_type<tc>, window_params = [{pipeline_mode = #tpu.pipeline_mode<synchronous>, transform_indices = @transform_0, window_bounds = array<i64: 8, 512>}, {pipeline_mode = #tpu.pipeline_mode<synchronous>, transform_indices = @transform_1, window_bounds = array<i64: 512, 128>}, {pipeline_mode = #tpu.pipeline_mode<synchronous>, transform_indices = @transform_2, window_bounds = array<i64: 1, 128>}, {transform_indices = @transform_3, window_bounds = array<i64: 128, 128>}, {transform_indices = @transform_4, window_bounds = array<i64: 1, 128>}, {transform_indices = @transform_5, window_bounds = array<i64: 8, 128>}]} {
    %c0 = arith.constant 0 : index
    %c0_0 = arith.constant 0 : index
    %0 = vector.load %arg1[%c0, %c0_0] : memref<8x512xbf16, #tpu.memory_space<vmem>>, vector<8x512xbf16>
    %c0_1 = arith.constant 0 : index
    %c0_2 = arith.constant 0 : index
    %1 = vector.load %arg2[%c0_1, %c0_2] : memref<512x128xbf16, #tpu.memory_space<vmem>>, vector<512x128xbf16>
    %cst = arith.constant dense<0.000000e+00> : vector<8x128xf32>
    %2 = tpu.matmul %0, %1, %cst {dimension_numbers = #tpu.dot_dimension_numbers<[1], [0], [0], [1], [0, 0, 1, 1], [], []>} : vector<8x512xbf16>, vector<512x128xbf16>, vector<8x128xf32> -> vector<8x128xf32>
    %c0_3 = arith.constant 0 : index
    %c0_4 = arith.constant 0 : index
    %3 = vector.load %arg3[%c0_3, %c0_4] : memref<1x128xf32, #tpu.memory_space<vmem>>, vector<1x128xf32>
    %4 = vector.broadcast %3 : vector<1x128xf32> to vector<8x128xf32>
    %5 = arith.addf %2, %4 : vector<8x128xf32>
    %6 = arith.truncf %5 : vector<8x128xf32> to vector<8x128xbf16>
    %c0_5 = arith.constant 0 : index
    %c0_6 = arith.constant 0 : index
    %7 = vector.load %arg4[%c0_5, %c0_6] : memref<128x128xbf16, #tpu.memory_space<vmem>>, vector<128x128xbf16>
    %cst_7 = arith.constant dense<0.000000e+00> : vector<8x128xf32>
    %8 = tpu.matmul %6, %7, %cst_7 {dimension_numbers = #tpu.dot_dimension_numbers<[1], [0], [0], [1], [0, 0, 1, 1], [], []>} : vector<8x128xbf16>, vector<128x128xbf16>, vector<8x128xf32> -> vector<8x128xf32>
    %c0_8 = arith.constant 0 : index
    %c0_9 = arith.constant 0 : index
    %9 = vector.load %arg5[%c0_8, %c0_9] : memref<1x128xf32, #tpu.memory_space<vmem>>, vector<1x128xf32>
    %10 = vector.broadcast %9 : vector<1x128xf32> to vector<8x128xf32>
    %11 = arith.addf %8, %10 : vector<8x128xf32>
    %c0_10 = arith.constant 0 : index
    %c0_11 = arith.constant 0 : index
    %12 = vector.load %arg6[%c0_10, %c0_11] : memref<8x128xf32, #tpu.memory_space<vmem>>, vector<8x128xf32>
    tpu.vector_store %arg6[%c0_10, %c0_11], %11 {strides = array<i32>} : memref<8x128xf32, #tpu.memory_space<vmem>>, vector<8x128xf32>,
    return
  }
  func.func @transform_0(%arg0: i32) -> (i32, i32) {
    %c0_i32 = arith.constant 0 : i32
    %c0_i32_0 = arith.constant 0 : i32
    %c0_i32_1 = arith.constant 0 : i32
    return %c0_i32, %c0_i32_0 : i32, i32
  }
  func.func @transform_1(%arg0: i32) -> (i32, i32) {
    %c0_i32 = arith.constant 0 : i32
    %c0_i32_0 = arith.constant 0 : i32
    %c0_i32_1 = arith.constant 0 : i32
    return %c0_i32, %c0_i32_0 : i32, i32
  }
  func.func @transform_2(%arg0: i32) -> (i32, i32) {
    %c0_i32 = arith.constant 0 : i32
    %c0_i32_0 = arith.constant 0 : i32
    %c0_i32_1 = arith.constant 0 : i32
    return %c0_i32, %c0_i32_0 : i32, i32
  }
  func.func @transform_3(%arg0: i32) -> (i32, i32) {
    %c0_i32 = arith.constant 0 : i32
    %c0_i32_0 = arith.constant 0 : i32
    return %c0_i32, %arg0 : i32, i32
  }
  func.func @transform_4(%arg0: i32) -> (i32, i32) {
    %c0_i32 = arith.constant 0 : i32
    %c0_i32_0 = arith.constant 0 : i32
    return %c0_i32, %arg0 : i32, i32
  }
  func.func @transform_5(%arg0: i32) -> (i32, i32) {
    %c0_i32 = arith.constant 0 : i32
    %c0_i32_0 = arith.constant 0 : i32
    return %c0_i32, %arg0 : i32, i32
  }
}

</mosaic_0001>

<bundles_post_ra>
// kernel: simple_cbow_forward.1
= control target key start
LH: loop header
LB: loop body
LE: loop exit
PB: predicated region body
PF: predicated region fallthrough
CT: control target
= control target key end

     0   :  { %10 = vsyncpa [#allocation3], 0  ;;  %s1405_s0 = inlined_call_operand.vmem [shape: bf16[8,512], index: 0, kind: input, shape index: {}]   ;;  %s1406_s1 = inlined_call_operand.hbm [shape: bf16[512,128], index: 1, kind: input, shape index: {}]   ;;  %s1407_s2 = inlined_call_operand.vmem [shape: f32[1,128], index: 2, kind: input, shape index: {}]   ;;  %s1408_s3 = inlined_call_operand.hbm [shape: bf16[128,256], index: 3, kind: input, shape index: {}]   ;;  %s1409_s4 = inlined_call_operand.vmem [shape: f32[1,256], index: 4, kind: input, shape index: {}]   ;;  %s1410_s5 = inlined_call_operand.hbm [shape: f32[8,256], index: 5, kind: output, shape index: {}]  }
   0x1   :  { %11 = vsyncpa [#allocation6], 0 }
   0x2   :  { %13 = vsyncpa [#allocation6 + $0x1], 0 }
   0x3   :  { %14 = vsyncpa [#allocation4], 0 }
   0x4   :  { %16 = vsyncpa [#allocation4 + $0x1], 0  ;;  %s1235_s18 = smov 0   ;;  %s1237_s19 = smov 0  }
   0x5   :  { %s1239_s20 = smov 0   ;;  %s1241_s21 = smov 0  }
   0x6 LB: > { %s1256_s22 = sadd.s32 4294967295, %s1199_s21   ;;  %s793_s23 = sadd.s32 4294967294, %s1199_s21   ;;  %s1199_s21 = sphi %s1241_s21, %s1422_s21   ;;  %s1195_s20 = sphi %s1239_s20, %s1421_s20   ;;  %s1191_s19 = sphi %s1237_s19, %s1420_s19   ;;  %s1187_s18 = sphi %s1235_s18, %s1419_s18  }
   0x7   : > { %p105_p0 = scmp.ne.s32.totalorder %s1191_s19, %s1187_s18  ;;  %p106_p1 = scmp.eq.s32.totalorder %s1256_s22, 0 }
   0x8   : > { %p155_p2 = scmp.eq.s32.totalorder %s1256_s22, 1  ;;  %p161_p3 = scmp.eq.s32.totalorder %s793_s23, 1 }
   0x9   : > { %p1265_p4 = por %p106_p1, %p105_p0  ;;  %p794_p5 = scmp.ge.s32.totalorder %s1199_s21, 1 }
   0xa   : > { %p1270_p6 = por %p161_p3, %p105_p0  ;;  %p168_p7 = scmp.lt.s32.totalorder %s1199_s21, 3 }
   0xb   : > { %s182_s28 = sshll.u32 %s1406_s1, 4  ;;  %s1201_s30 = smov [#allocation2]   ;;  %s183_s28 = int_to_ptr.hbm [resolvable:$true] %s182_s28 }
   0xc   : > { %p1278_p8 = pnand %p794_p5, %p168_p7  ;;  %s184_s6 = sshll.u32 %s1201_s30, 4  ;;  %s185_s6 = int_to_ptr.vmem [resolvable:$true] %s184_s6 }
   0xd   : > { %s1288_s7 = sadd.s32 1, %s1199_s21   ;;  %s1411_s8 = smov 64  }
   0xe   : > { %p1015_p9 = pneg %p1278_p8  ;;  %s1203_s9 = smov 4  }
   0xf   : > { %s89_s10 = ssub.s32 %s1199_s21, %s1288_s7  ;;  %s92_s11 = sadd.s32 1, %s1195_s20 }
  0x10   : > { %p1016_p10 = pnand %p1015_p9, %p106_p1  ;;  %p90_p12 = scmp.eq.s32.totalorder %s89_s10, 0 }
  0x11   : > { %p99_p13 = scmp.ne.s32.totalorder %s1195_s20, %s1191_s19  ;;  %p100_p0 = scmp.eq.s32.totalorder %s1199_s21, 0 }
  0x12   : > { %1018 = dma.hbm_to_vmem [thread:$0]  (!%p1016_p10), %s183_s28, 4096, %s185_s6, [#allocation3], %s1411_s8, %s1411_s8, %s1203_s9  }
  0x13   : > { %p1028_p3 = scmp.lt.s32.totalorder %s1199_s21, 2  ;;  %p101_p5 = por %p100_p0, %p99_p13 }
  0x14   : > { %s1301_s12 = scalar_select %p90_p12, %s1195_s20, %s92_s11  }
  0x15   : > { %p1305_p7 = por %p155_p2, %p99_p13  ;;  %s201_s14 = sand.u32 1, %s1195_s20  }
  0x16   : > { %s798_s15 = sshll.u32 %s1199_s21, 2  ;;  %s797_s16 = sshll.u32 %s201_s14, 6 }
  0x17   : > { %s209_s26 = scalar_lea.hbm %s1408_s3, %s798_s15  ;;  %s205_s28 = scalar_lea.vmem [#allocation5], %s797_s16 }
  0x18   : > { %s210_s27 = sshll.u32 %s209_s26, 4  ;;  %s212_s30 = sshll.u32 %s205_s28, 4  ;;  %s211_s27 = int_to_ptr.hbm [resolvable:$true] %s210_s27  ;;  %s213_s30 = int_to_ptr.vmem [resolvable:$true] %s212_s30 }
  0x19   : > { %p1316_p9 = pnand %p1028_p3, %p101_p5  ;;  %s202_s10 = scalar_lea.sflag [#allocation6], %s201_s14 }
  0x1a   : > { %s1099_s11 = sshra.s32 %s211_s27, 4  ;;  %s1106_s17 = scalar_lea.hbm %s1408_s3, 128  ;;  %s1100_s11 = int_to_ptr.hbm [resolvable:$true] %s1099_s11 }
  0x1b   : > { %s1101_s8 = scalar_lea.hbm %s1100_s11, 64  ;;  %p1103_p10 = pneg %p1316_p9 }
  0x1c   : > { %p1102_p2 = scmp.ne.s32.totalorder %s1100_s11, %s1101_s8  ;;  %p1107_p0 = scmp.lt.s32.totalorder %s1100_s11, %s1408_s3 }
  0x1d   : > { %p1108_p3 = scmp.lt.s32.totalorder %s1106_s17, %s1101_s8 }
  0x1e   : > { %p1104_p12 = pnand %p1103_p10, %p1102_p2 }
  0x1f   : > { %p1109_p5 = por %p1108_p3, %p1107_p0 }
  0x20   : > { %p1105_p13 = pneg %p1104_p12 }
  0x22   : > { %p1110_p11 = pnand %p1109_p5, %p1105_p13 }
  0x24   : > { %1113 = shalt.err (!%p1110_p11)
}
  0x25   : > { %s1204_s14 = smov 128   ;;  %s1417_s28 = smov 64  }
  0x26   : > { %1022 = dma.hbm_to_vmem [thread:$0]  (!%p1316_p9), %s211_s27, 1024, %s213_s30, %s202_s10, %s1204_s14, %s1417_s28, %s1203_s9  }
  0x27   : > { %230 = sbr.rel (%p1278_p8) target bundleno = 355 (0x163), region = 40 }
  0x2c   : > { %1174 = dma.done.wait (%p106_p1), [#allocation3], 4096  }
  0x2d   : > { %1176 = vsyncadd (%p106_p1), [#allocation3], 4294963200  ;;  %s1339_s8 = sand.u32 1, %s1191_s19  }
  0x2e   : > { %s801_s11 = sshll.u32 %s1339_s8, 6  ;;  %s238_s6 = scalar_lea.sflag [#allocation6], %s1339_s8 }
  0x2f   : > { %s1343_s15 = scalar_lea.vmem [#allocation5], %s801_s11 }
  0x30   : > { %1178 = dma.done.wait (%p1265_p4), %s238_s6, 1024  }
  0x31   : > { %1180 = vsyncadd (%p1265_p4), %s238_s6, 4294966272  ;;  %v974_v0 = vld [vmem:[#allocation2 + $0x38] sm:$0xff]  ;;  %v973_v4 = vld [vmem:[#allocation2 + $0x30] sm:$0xff]  ;;  %p272_p1 = scmp.lt.s32.totalorder %s1256_s22, 1  ;;  %s964_s14 = sshll.u32 %s1256_s22, 3 }
  0x32   : > { %v982_v1 = vld [vmem:[#allocation2 + $0x78] sm:$0xff]  ;;  %551 = vmatpush.bf16.msra.mxu0 %v974_v0  ;;  %v981_v5 = vld [vmem:[#allocation2 + $0x70] sm:$0xff]  ;;  %v972_v8 = vld [vmem:[#allocation2 + $0x28] sm:$0xff]  ;;  %s802_s28 = sshll.u32 %s1339_s8, 3  ;;  %s687_s27 = scalar_lea.sflag [#allocation4], %s1339_s8 }
  0x33   : > { %v990_v2 = vld [vmem:[#allocation2 + $0xb8] sm:$0xff]  ;;  %564 = vmatpush.bf16.msra.mxu1 %v982_v1  ;;  %v989_v6 = vld [vmem:[#allocation2 + $0xb0] sm:$0xff]  ;;  %v980_v9 = vld [vmem:[#allocation2 + $0x68] sm:$0xff]  ;;  %s273_s30 = scalar_select %p272_p1, %s1256_s22, 1 }
  0x34   : > { %v998_v3 = vld [vmem:[#allocation2 + $0xf8] sm:$0xff]  ;;  %577 = vmatpush.bf16.msra.mxu2 %v990_v2  ;;  %v997_v7 = vld [vmem:[#allocation2 + $0xf0] sm:$0xff]  ;;  %v988_v10 = vld [vmem:[#allocation2 + $0xa8] sm:$0xff]  ;;  %s271_s24 = scalar_lea.vmem [#allocation7], %s802_s28 }
  0x35   : > { %590 = vmatpush.bf16.msra.mxu3 %v998_v3  ;;  %v996_v11 = vld [vmem:[#allocation2 + $0xe8] sm:$0xff]  ;;  %v971_v12 = vld [vmem:[#allocation2 + $0x20] sm:$0xff]  ;;  %v970_v16 = vld [vmem:[#allocation2 + $0x18] sm:$0xff]  ;;  %s274_s17 = scalar_lea.vmem %s1409_s4, %s273_s30  ;;  %s699_s29 = sshll.u32 %s271_s24, 4  ;;  %s700_s29 = int_to_ptr.vmem [resolvable:$true] %s699_s29 }
  0x36   : > { %552 = vmatpush.bf16.msra.mxu0 %v973_v4  ;;  %v979_v13 = vld [vmem:[#allocation2 + $0x60] sm:$0xff]  ;;  %v978_v17 = vld [vmem:[#allocation2 + $0x58] sm:$0xff]  ;;  %v969_v20 = vld [vmem:[#allocation2 + $0x10] sm:$0xff] }
  0x37   : > { %565 = vmatpush.bf16.msra.mxu1 %v981_v5  ;;  %v987_v14 = vld [vmem:[#allocation2 + $0xa0] sm:$0xff]  ;;  %v986_v18 = vld [vmem:[#allocation2 + $0x98] sm:$0xff]  ;;  %v977_v21 = vld [vmem:[#allocation2 + $0x50] sm:$0xff] }
  0x38   : > { %578 = vmatpush.bf16.msra.mxu2 %v989_v6  ;;  %v995_v15 = vld [vmem:[#allocation2 + $0xe0] sm:$0xff]  ;;  %v994_v19 = vld [vmem:[#allocation2 + $0xd8] sm:$0xff]  ;;  %v985_v22 = vld [vmem:[#allocation2 + $0x90] sm:$0xff] }
  0x39   : > { %591 = vmatpush.bf16.msra.mxu3 %v997_v7  ;;  %v993_v23 = vld [vmem:[#allocation2 + $0xd0] sm:$0xff]  ;;  %v968_v24 = vld [vmem:[#allocation2 + $0x8] sm:$0xff]  ;;  %v275_v26 = vld [vmem:[%s1405_s0] sm:$0xff] }
  0x3a   : > { %553 = vmatpush.bf16.msra.mxu0 %v972_v8  ;;  %v976_v25 = vld [vmem:[#allocation2 + $0x48] sm:$0xff]  ;;  %v347_v30 = vunpack.c.l.b16 %v275_v26  ;;  %v348_v31 = vunpack.c.h.b16 %v275_v26  ;;  %v967_v32 = vld [vmem:[#allocation2] sm:$0xff]  ;;  %v1006_v38 = vld [vmem:[%s1343_s15 + $0x38] sm:$0xff] }
  0x3b   : > { %566 = vmatpush.bf16.msra.mxu1 %v980_v9  ;;  %v984_v27 = vld [vmem:[#allocation2 + $0x88] sm:$0xff]  ;;  %v975_v33 = vld [vmem:[#allocation2 + $0x40] sm:$0xff]  ;;  %v1005_v43 = vld [vmem:[%s1343_s15 + $0x30] sm:$0xff] }
  0x3c   : > { %579 = vmatpush.bf16.msra.mxu2 %v988_v10  ;;  %v992_v28 = vld [vmem:[#allocation2 + $0xc8] sm:$0xff]  ;;  %v983_v36 = vld [vmem:[#allocation2 + $0x80] sm:$0xff]  ;;  %v351_v39 = vpack.c.b16 %v347_v30, %v347_v30  ;;  %v352_v40 = vpack.c.b16 %v348_v31, %v348_v31  ;;  %v1002_v46 = vld [vmem:[%s1343_s15 + $0x18] sm:$0xff] }
  0x3d   : > { %592 = vmatpush.bf16.msra.mxu3 %v996_v11  ;;  %v276_v29 = vld [vmem:[%s1405_s0 + $0x8] sm:$0xff]  ;;  %v991_v37 = vld [vmem:[#allocation2 + $0xc0] sm:$0xff]  ;;  %v1001_v47 = vld [vmem:[%s1343_s15 + $0x10] sm:$0xff] }
  0x3e   : > { %554 = vmatpush.bf16.msra.mxu0 %v971_v12  ;;  %v349_v34 = vunpack.c.l.b16 %v276_v29  ;;  %v350_v35 = vunpack.c.h.b16 %v276_v29  ;;  %v1004_v44 = vld [vmem:[%s1343_s15 + $0x28] sm:$0xff]  ;;  %v1003_v45 = vld [vmem:[%s1343_s15 + $0x20] sm:$0xff] }
  0x3f   : > { %567 = vmatpush.bf16.msra.mxu1 %v979_v13  ;;  %v1000_v48 = vld [vmem:[%s1343_s15 + $0x8] sm:$0xff]  ;;  %v999_v49 = vld [vmem:[%s1343_s15] sm:$0xff]  ;;  %s697_s15 = scalar_lea.hbm %s1410_s5, %s964_s14 }
  0x40   : > { %580 = vmatpush.bf16.msra.mxu2 %v987_v14  ;;  %v353_v41 = vpack.c.b16 %v349_v34, %v349_v34  ;;  %v354_v42 = vpack.c.b16 %v350_v35, %v350_v35  ;;  %v1067_v50 = vld [vmem:[%s1407_s2] ss:$0 sm:$0xff]  ;;  %s701_s9 = sshll.u32 %s697_s15, 4  ;;  %s702_s9 = int_to_ptr.hbm [resolvable:$true] %s701_s9 }
  0x41   : > { %593 = vmatpush.bf16.msra.mxu3 %v995_v15  ;;  %v1068_v0 = vld [vmem:[%s274_s17] ss:$0 sm:$0xff]  ;;  %s1143_s30 = sshra.s32 %s702_s9, 4  ;;  %s1149_s17 = scalar_lea.hbm %s1410_s5, 16  ;;  %s1144_s30 = int_to_ptr.hbm [resolvable:$true] %s1143_s30 }
  0x42   : > { %555 = vmatpush.bf16.msra.mxu0 %v970_v16  ;;  %s1145_s10 = scalar_lea.hbm %s1144_s30, 8  ;;  %p1150_p9 = scmp.lt.s32.totalorder %s1144_s30, %s1410_s5 }
  0x43   : > { %568 = vmatpush.bf16.msra.mxu1 %v978_v17  ;;  %p1146_p4 = scmp.ne.s32.totalorder %s1144_s30, %s1145_s10  ;;  %p1151_p2 = scmp.lt.s32.totalorder %s1149_s17, %s1145_s10 }
  0x44   : > { %581 = vmatpush.bf16.msra.mxu2 %v986_v18 }
  0x45   : > { %594 = vmatpush.bf16.msra.mxu3 %v994_v19  ;;  %p1147_p8 = pnand %p1146_p4, %p1305_p7  ;;  %p1152_p10 = por %p1151_p2, %p1150_p9 }
  0x46   : > { %556 = vmatpush.bf16.msra.mxu0 %v969_v20 }
  0x47   : > { %569 = vmatpush.bf16.msra.mxu1 %v977_v21  ;;  %p1148_p11 = pneg %p1147_p8 }
  0x48   : > { %582 = vmatpush.bf16.msra.mxu2 %v985_v22 }
  0x49   : > { %595 = vmatpush.bf16.msra.mxu3 %v993_v23  ;;  %p1153_p12 = pnand %p1152_p10, %p1148_p11 }
  0x4a   : > { %557 = vmatpush.bf16.msra.mxu0 %v968_v24 }
  0x4b   : > { %570 = vmatpush.bf16.msra.mxu1 %v976_v25 }
  0x4c   : > { %583 = vmatpush.bf16.msra.mxu2 %v984_v27 }
  0x4d   : > { %596 = vmatpush.bf16.msra.mxu3 %v992_v28 }
  0x4e   : > { %558 = vmatpush.bf16.msra.mxu0 %v967_v32 }
  0x4f   : > { %571 = vmatpush.bf16.msra.mxu1 %v975_v33 }
  0x50   : > { %584 = vmatpush.bf16.msra.mxu2 %v983_v36 }
  0x51   : > { %597 = vmatpush.bf16.msra.mxu3 %v991_v37  ;;  %559 = vmatmul.bf16.vlgmr.msra.gmra.mxu0 %v351_v39 }
  0x52   : > { %672 = vmatpush.bf16.msrb.mxu0 %v1006_v38  ;;  %572 = vmatmul.bf16.vlgmr.msra.gmra.mxu1 %v352_v40 }
  0x53   : > { %585 = vmatmul.bf16.vlgmr.msra.gmra.mxu2 %v353_v41 }
  0x54   : > { %598 = vmatmul.bf16.vlgmr.msra.gmra.mxu3 %v354_v42 }
  0x56   : > { %673 = vmatpush.bf16.msrb.mxu0 %v1005_v43 }
  0x5a   : > { %674 = vmatpush.bf16.msrb.mxu0 %v1004_v44 }
  0x5e   : > { %675 = vmatpush.bf16.msrb.mxu0 %v1003_v45 }
  0x62   : > { %676 = vmatpush.bf16.msrb.mxu0 %v1002_v46 }
  0x66   : > { %677 = vmatpush.bf16.msrb.mxu0 %v1001_v47 }
  0x6a   : > { %678 = vmatpush.bf16.msrb.mxu0 %v1000_v48 }
  0x6e   : > { %679 = vmatpush.bf16.msrb.mxu0 %v999_v49 }
  0xce   : > { %v560_v51 = vpop.f32.mrf.mxu0 }
  0xcf   : > { %v573_v52 = vpop.f32.mrf.mxu1  ;;  %v561_v53 = vadd.f32 %v1067_v50, %v560_v51 }
  0xd1   : > { %v574_v54 = vadd.f32 %v573_v52, %v561_v53 }
  0xd6   : > { %v586_v55 = vpop.f32.mrf.mxu2  ;;  %v562_v58 = vpop.f32.mrf.mxu0 }
  0xd7   : > { %v599_v56 = vpop.f32.mrf.mxu3  ;;  %v587_v57 = vadd.f32 %v586_v55, %v574_v54  ;;  %v575_v59 = vpop.f32.mrf.mxu1 }
  0xd9   : > { %v600_v60 = vadd.f32 %v599_v56, %v587_v57 }
  0xdb   : > { %v603_v61 = vpack.c.bf16 %v600_v60, %v600_v60 }
  0xdd   : > { %680 = vmatmul.bf16.vlgmr.msrb.gmra.mxu0 %v603_v61 }
  0xde   : > { %v588_v62 = vpop.f32.mrf.mxu2 }
  0xdf   : > { %v601_v63 = vpop.f32.mrf.mxu3 }
 0x15a   : > { %v681_v1 = vpop.f32.mrf.mxu0 }
 0x15b   : > { %v682_v2 = vadd.f32 %v1068_v0, %v681_v1 }
 0x15d   : > { %685 = vst [vmem:[%s271_s24] sm:$0xff] %v682_v2 }
 0x15e   : > { %1156 = shalt.err (!%p1153_p12)
}
 0x15f   : > { %1013 = dma.vmem_to_hbm [thread:$0]  (%p1305_p7), %s700_s29, 128, %s702_s9, %s687_s27  }
 0x162   : > { %v683_v3 = vpop.f32.mrf.mxu0 }
 0x163 PF: > { %s713_s8 = sand.u32 1, %s1187_s18   ;;  %p1418_p13 = scmp.ge.s32.totalorder %s1199_s21, 2 }
 0x164   : > { %s714_s14 = scalar_lea.sflag [#allocation4], %s713_s8 }
 0x165   : > { %p1024_p0 = pnand %p1418_p13, %p1270_p6 }
 0x167   : > { %p1025_p3 = pneg %p1024_p0 }
 0x169   : > { %1182 = dma.done.wait (%p1025_p3), %s714_s14, 128  }
 0x16a   : > { %1184 = vsyncadd (%p1025_p3), %s714_s14, 4294967168  ;;  %p19_p5 = scmp.ge.s32.totalorder %s1288_s7, 4   ;;  %s1419_s18 = smov %s1191_s19 }
 0x16b   : > { %s1420_s19 = smov %s1195_s20  ;;  %s1421_s20 = smov %s1301_s12 }
 0x16c   : > { %s1422_s21 = smov %s1288_s7  ;;  %21 = sbr.rel (!%p19_p5) target bundleno = 6 (0x6), region = 93 }
 0x171   :  { %720 = vsyncpa [#allocation3], 1 }
 0x172   :  { %722 = vsyncpa [#allocation3 + $0x1], 1 }
 0x173   :  { %723 = vsyncpa [#allocation6], 1 }
 0x174   :  { %725 = vsyncpa [#allocation6 + $0x1], 1 }
 0x175   :  { %726 = vsyncpa [#allocation4], 1 }
 0x176   :  { %728 = vsyncpa [#allocation4 + $0x1], 1 }

</bundles_post_ra>
